<compile_context>
chip_gen: v7x
topology: tpu7x:2x2x1
jax: 0.10.0
libtpu: 0.0.40
codegen_flags: <defaults>
</compile_context>

<pallas_src>
import functools

import jax
import jax.numpy as jnp
from jax.experimental import pallas as pl
from jax.experimental.pallas import tpu as pltpu


def _fused_loss_kernel(x1_ref, x2_ref, t_ref,
                       num1_ref, den1_ref, ce1_ref,
                       num2_ref, den2_ref, ce2_ref):
    # x*_ref : (C, TM)  logits tile (channels on sublanes, pixels on lanes)
    # t_ref  : (1, TM)  int32 target class per pixel
    # num/den: (C, 1)   per-channel accumulators (per core slice)
    # ce     : (1, 1)   scalar CE-sum accumulator (per core slice)
    n = pl.program_id(1)
    p = pl.program_id(2)

    @pl.when((n == 0) & (p == 0))
    def _init():
        num1_ref[...] = jnp.zeros_like(num1_ref)
        den1_ref[...] = jnp.zeros_like(den1_ref)
        ce1_ref[...] = jnp.zeros_like(ce1_ref)
        num2_ref[...] = jnp.zeros_like(num2_ref)
        den2_ref[...] = jnp.zeros_like(den2_ref)
        ce2_ref[...] = jnp.zeros_like(ce2_ref)

    C, TM = x1_ref.shape
    t = t_ref[...]                                            # (1, TM) int32
    chan = jax.lax.broadcasted_iota(jnp.int32, (C, TM), 0)    # channel id / sublane
    onehot = (chan == t).astype(jnp.float32)                  # (C, TM), shared
    oh_sum = jnp.sum(onehot, axis=1, keepdims=True)           # (C, 1)

    def _branch(x_ref, num_ref, den_ref, ce_ref):
        x = x_ref[...].astype(jnp.float32)                    # (C, TM)
        m = jnp.max(x, axis=0, keepdims=True)                 # (1, TM)
        e = jnp.exp(x - m)                                    # (C, TM)
        s = jnp.sum(e, axis=0, keepdims=True)                 # (1, TM)
        inv_s = pl.reciprocal(s, approx=False)                # 1 recip per pixel
        pe = jnp.exp(e * inv_s)                               # exp(softmax)
        x_t = jnp.sum(x * onehot, axis=0, keepdims=True)      # logit @ target class
        # Dice pieces (per channel, summed over pixels of this tile).
        num_ref[...] += jnp.sum(pe * onehot, axis=1, keepdims=True)
        den_ref[...] += jnp.sum(pe, axis=1, keepdims=True) + oh_sum
        # CE sum: -log_softmax[target] = m + log(s) - x_t.
        ce_ref[...] += jnp.sum(m + jnp.log(s) - x_t, axis=1, keepdims=True)

    _branch(x1_ref, num1_ref, den1_ref, ce1_ref)
    _branch(x2_ref, num2_ref, den2_ref, ce2_ref)


def _pick_tm(P, max_tm):
    """Pixel-tile size: multiple of 128 dividing P (<= max_tm), else full P."""
    if P <= max_tm:
        return P
    best = 0
    t = 128
    while t <= max_tm:
        if P % t == 0:
            best = t
        t += 128
    return best if best else P  # full-extent fallback is always legal


def _fused_reduce(x1, x2, t, max_tm):
    """One fused Pallas reduction over both logit tensors.

    x1, x2 : (N, C, P) logits (native dtype), t : (N, 1, P) int32.
    Returns per-core partial (num1, den1, ce1, num2, den2, ce2).
    """
    N, C, P = x1.shape
    tm = _pick_tm(P, max_tm)
    T = P // tm
    num_cores = 2 if (T % 2 == 0 and T >= 2) else 1   # v7x: 2 TCs; no-op elsewhere
    Tc = T // num_cores
    f32 = jnp.float32

    acc_shape = jax.ShapeDtypeStruct((num_cores, C, 1), f32)
    ce_shape = jax.ShapeDtypeStruct((num_cores, 1, 1), f32)

    def x_map(c, n, p):
        return (n, 0, c * Tc + p)

    def t_map(c, n, p):
        return (n, 0, c * Tc + p)

    def acc_map(c, n, p):
        return (c, 0, 0)

    return pl.pallas_call(
        _fused_loss_kernel,
        out_shape=(acc_shape, acc_shape, ce_shape,
                   acc_shape, acc_shape, ce_shape),
        grid_spec=pltpu.PrefetchScalarGridSpec(
            num_scalar_prefetch=0,
            grid=(num_cores, N, Tc),
            in_specs=[
                pl.BlockSpec((None, C, tm), x_map),
                pl.BlockSpec((None, C, tm), x_map),
                pl.BlockSpec((None, 1, tm), t_map),
            ],
            out_specs=[
                pl.BlockSpec((None, C, 1), acc_map),
                pl.BlockSpec((None, C, 1), acc_map),
                pl.BlockSpec((None, 1, 1), acc_map),
                pl.BlockSpec((None, C, 1), acc_map),
                pl.BlockSpec((None, C, 1), acc_map),
                pl.BlockSpec((None, 1, 1), acc_map),
            ],
        ),
        compiler_params=pltpu.CompilerParams(
            dimension_semantics=("parallel", "arbitrary", "arbitrary")),
    )(x1, x2, t)


@functools.partial(jax.jit, static_argnames=("max_tm",))
def combined_loss_adv2(inp, inp2, target, weight=1.0, max_tm=8192):
    """JAX/Pallas equivalent of CombinedLoss_adv2.forward.

    inp, inp2 : (N, C, H, W) logits (any float dtype; cast to f32 in-kernel)
    target    : (N, H, W) integer class indices
    """
    N, C, H, W = inp.shape
    P = H * W
    M = N * P
    eps_dice = 1e-4  # DiceLoss eps = 0.0001

    # Free, contiguous reshapes — no transpose, no dtype upcast in HBM.
    x1 = inp.reshape(N, C, P)
    x2 = inp2.reshape(N, C, P)
    t = target.astype(jnp.int32).reshape(N, 1, P)

    n1, d1, c1, n2, d2, c2 = _fused_reduce(x1, x2, t, max_tm)

    def dice(num_parts, den_parts):
        num = jnp.sum(num_parts, axis=0)[:, 0]          # (C,)
        den = jnp.sum(den_parts, axis=0)[:, 0]          # (C,)
        return jnp.sum(1.0 - (2.0 * num) / (den + eps_dice)) / C

    dice1 = dice(n1, d1)
    dice2 = dice(n2, d2)
    ce1 = jnp.sum(c1) / M                                # mean CE over all pixels
    ce2 = jnp.sum(c2) / M

    w = jnp.asarray(weight, jnp.float32)
    # y = y1 + y2 + z3 + z1 * 0.01
    return ce1 * w + dice1 + dice2 + (ce2 * w) * 0.01


def _reference_loss(inp, inp2, target, weight=1.0):
    """Pure-JAX reference of the PyTorch forward for a correctness check."""
    eps_dice = 1e-4
    t = target.astype(jnp.int32)

    def ce(x):
        logsm = jax.nn.log_softmax(x.astype(jnp.float32), axis=1)
        picked = jnp.take_along_axis(logsm, t[:, None], axis=1)[:, 0]
        return -jnp.mean(picked)

    def dice(x):
        sm = jax.nn.softmax(x.astype(jnp.float32), axis=1)
        pe = jnp.exp(sm)
        oh = jax.nn.one_hot(t, x.shape[1], axis=1, dtype=jnp.float32)
        num = 2.0 * jnp.sum(pe * oh, axis=(0, 2, 3))
        den = jnp.sum(pe + oh, axis=(0, 2, 3)) + eps_dice
        return jnp.sum(1.0 - num / den) / x.shape[1]

    return ce(inp) * weight + dice(inp) + dice(inp2) + ce(inp2) * weight * 0.01


if __name__ == "__main__":
    key = jax.random.PRNGKey(0)
    k1, k2, k3 = jax.random.split(key, 3)

    N, C, H, W = 2, 4, 16, 16
    x1 = jax.random.normal(k1, (N, C, H, W), dtype=jnp.float32)
    x2 = jax.random.normal(k2, (N, C, H, W), dtype=jnp.float32)
    tgt = jax.random.randint(k3, (N, H, W), 0, C, dtype=jnp.int32)

    ref = jax.block_until_ready(_reference_loss(x1, x2, tgt, weight=1.0))

    # Multi-tile path (tm=128 -> 2 pixel tiles -> exercises the 2-"core"
    # parallel axis and cross-tile accumulation).
    out_tiled = jax.block_until_ready(
        combined_loss_adv2(x1, x2, tgt, weight=1.0, max_tm=128))
    assert jnp.allclose(out_tiled, ref, rtol=1e-4, atol=1e-4), (out_tiled, ref)

    # Default path (single full-extent pixel block per batch element).
    out = jax.block_until_ready(combined_loss_adv2(x1, x2, tgt, weight=1.0))
    assert jnp.allclose(out, ref, rtol=1e-4, atol=1e-4), (out, ref)

    print("KERNEL_OK")
</pallas_src>

<mosaic_0001>
module attributes {stable_mosaic.version = 11 : i64} {
  func.func @_fused_loss_kernel(%arg0: i32, %arg1: i32, %arg2: i32, %arg3: memref<1x4x128xf32, #tpu.memory_space<vmem>>, %arg4: memref<1x4x128xf32, #tpu.memory_space<vmem>>, %arg5: memref<1x1x128xi32, #tpu.memory_space<vmem>>, %arg6: memref<1x4x1xf32, #tpu.memory_space<vmem>>, %arg7: memref<1x4x1xf32, #tpu.memory_space<vmem>>, %arg8: memref<1x1x1xf32, #tpu.memory_space<vmem>>, %arg9: memref<1x4x1xf32, #tpu.memory_space<vmem>>, %arg10: memref<1x4x1xf32, #tpu.memory_space<vmem>>, %arg11: memref<1x1x1xf32, #tpu.memory_space<vmem>>) attributes {dimension_semantics = [#tpu.dimension_semantics<parallel>, #tpu.dimension_semantics<arbitrary>, #tpu.dimension_semantics<arbitrary>], iteration_bounds = array<i64: 2, 2, 1>, scalar_prefetch = 0 : i64, scratch_operands = 0 : i64, tpu.core_type = #tpu.core_type<tc>, window_params = [{transform_indices = @transform_0, window_bounds = array<i64: 1, 4, 128>}, {transform_indices = @transform_1, window_bounds = array<i64: 1, 4, 128>}, {transform_indices = @transform_2, window_bounds = array<i64: 1, 1, 128>}, {transform_indices = @transform_3, window_bounds = array<i64: 1, 4, 1>}, {transform_indices = @transform_4, window_bounds = array<i64: 1, 4, 1>}, {transform_indices = @transform_5, window_bounds = array<i64: 1, 1, 1>}, {transform_indices = @transform_6, window_bounds = array<i64: 1, 4, 1>}, {transform_indices = @transform_7, window_bounds = array<i64: 1, 4, 1>}, {transform_indices = @transform_8, window_bounds = array<i64: 1, 1, 1>}]} {
    %c0_i32 = arith.constant 0 : i32
    %0 = arith.cmpi eq, %arg1, %c0_i32 : i32
    %c0_i32_0 = arith.constant 0 : i32
    %1 = arith.cmpi eq, %arg2, %c0_i32_0 : i32
    %2 = arith.andi %0, %1 : i1
    %3 = arith.extui %2 : i1 to i32
    %c0_i32_1 = arith.constant 0 : i32
    %4 = arith.cmpi ne, %3, %c0_i32_1 : i32
    scf.if %4 {
      %cst_58 = arith.constant 0.000000e+00 : f32
      %104 = vector.broadcast %cst_58 : f32 to vector<4x1xf32>
      %c0_59 = arith.constant 0 : index
      %c0_60 = arith.constant 0 : index
      %c0_61 = arith.constant 0 : index
      %105 = vector.load %arg6[%c0_59, %c0_60, %c0_61] : memref<1x4x1xf32, #tpu.memory_space<vmem>>, vector<1x4x1xf32>
      %106 = vector.shape_cast %105 : vector<1x4x1xf32> to vector<4x1xf32>
      %107 = vector.shape_cast %104 : vector<4x1xf32> to vector<1x4x1xf32>
      tpu.vector_store %arg6[%c0_59, %c0_60, %c0_61], %107 {strides = array<i32>} : memref<1x4x1xf32, #tpu.memory_space<vmem>>, vector<1x4x1xf32>,
      %cst_62 = arith.constant 0.000000e+00 : f32
      %108 = vector.broadcast %cst_62 : f32 to vector<4x1xf32>
      %c0_63 = arith.constant 0 : index
      %c0_64 = arith.constant 0 : index
      %c0_65 = arith.constant 0 : index
      %109 = vector.load %arg7[%c0_63, %c0_64, %c0_65] : memref<1x4x1xf32, #tpu.memory_space<vmem>>, vector<1x4x1xf32>
      %110 = vector.shape_cast %109 : vector<1x4x1xf32> to vector<4x1xf32>
      %111 = vector.shape_cast %108 : vector<4x1xf32> to vector<1x4x1xf32>
      tpu.vector_store %arg7[%c0_63, %c0_64, %c0_65], %111 {strides = array<i32>} : memref<1x4x1xf32, #tpu.memory_space<vmem>>, vector<1x4x1xf32>,
      %cst_66 = arith.constant 0.000000e+00 : f32
      %112 = vector.broadcast %cst_66 : f32 to vector<1x1xf32>
      %c0_67 = arith.constant 0 : index
      %c0_68 = arith.constant 0 : index
      %c0_69 = arith.constant 0 : index
      %113 = vector.load %arg8[%c0_67, %c0_68, %c0_69] : memref<1x1x1xf32, #tpu.memory_space<vmem>>, vector<1x1x1xf32>
      %114 = vector.shape_cast %113 : vector<1x1x1xf32> to vector<1x1xf32>
      %115 = vector.shape_cast %112 : vector<1x1xf32> to vector<1x1x1xf32>
      tpu.vector_store %arg8[%c0_67, %c0_68, %c0_69], %115 {strides = array<i32>} : memref<1x1x1xf32, #tpu.memory_space<vmem>>, vector<1x1x1xf32>,
      %cst_70 = arith.constant 0.000000e+00 : f32
      %116 = vector.broadcast %cst_70 : f32 to vector<4x1xf32>
      %c0_71 = arith.constant 0 : index
      %c0_72 = arith.constant 0 : index
      %c0_73 = arith.constant 0 : index
      %117 = vector.load %arg9[%c0_71, %c0_72, %c0_73] : memref<1x4x1xf32, #tpu.memory_space<vmem>>, vector<1x4x1xf32>
      %118 = vector.shape_cast %117 : vector<1x4x1xf32> to vector<4x1xf32>
      %119 = vector.shape_cast %116 : vector<4x1xf32> to vector<1x4x1xf32>
      tpu.vector_store %arg9[%c0_71, %c0_72, %c0_73], %119 {strides = array<i32>} : memref<1x4x1xf32, #tpu.memory_space<vmem>>, vector<1x4x1xf32>,
      %cst_74 = arith.constant 0.000000e+00 : f32
      %120 = vector.broadcast %cst_74 : f32 to vector<4x1xf32>
      %c0_75 = arith.constant 0 : index
      %c0_76 = arith.constant 0 : index
      %c0_77 = arith.constant 0 : index
      %121 = vector.load %arg10[%c0_75, %c0_76, %c0_77] : memref<1x4x1xf32, #tpu.memory_space<vmem>>, vector<1x4x1xf32>
      %122 = vector.shape_cast %121 : vector<1x4x1xf32> to vector<4x1xf32>
      %123 = vector.shape_cast %120 : vector<4x1xf32> to vector<1x4x1xf32>
      tpu.vector_store %arg10[%c0_75, %c0_76, %c0_77], %123 {strides = array<i32>} : memref<1x4x1xf32, #tpu.memory_space<vmem>>, vector<1x4x1xf32>,
      %cst_78 = arith.constant 0.000000e+00 : f32
      %124 = vector.broadcast %cst_78 : f32 to vector<1x1xf32>
      %c0_79 = arith.constant 0 : index
      %c0_80 = arith.constant 0 : index
      %c0_81 = arith.constant 0 : index
      %125 = vector.load %arg11[%c0_79, %c0_80, %c0_81] : memref<1x1x1xf32, #tpu.memory_space<vmem>>, vector<1x1x1xf32>
      %126 = vector.shape_cast %125 : vector<1x1x1xf32> to vector<1x1xf32>
      %127 = vector.shape_cast %124 : vector<1x1xf32> to vector<1x1x1xf32>
      tpu.vector_store %arg11[%c0_79, %c0_80, %c0_81], %127 {strides = array<i32>} : memref<1x1x1xf32, #tpu.memory_space<vmem>>, vector<1x1x1xf32>,
    } else {
    }
    %c0 = arith.constant 0 : index
    %c0_2 = arith.constant 0 : index
    %c0_3 = arith.constant 0 : index
    %5 = vector.load %arg5[%c0, %c0_2, %c0_3] : memref<1x1x128xi32, #tpu.memory_space<vmem>>, vector<1x1x128xi32>
    %6 = vector.shape_cast %5 : vector<1x1x128xi32> to vector<1x128xi32>
    %7 = tpu.iota {dimensions = array<i32: 0>} : vector<4x128xi32>
    %8 = vector.broadcast %6 : vector<1x128xi32> to vector<4x128xi32>
    %9 = arith.cmpi eq, %7, %8 : vector<4x128xi32>
    %10 = arith.extui %9 : vector<4x128xi1> to vector<4x128xi32>
    %11 = arith.sitofp %10 : vector<4x128xi32> to vector<4x128xf32>
    %cst = arith.constant dense<0.000000e+00> : vector<4xf32>
    %12 = vector.multi_reduction <add>, %11, %cst [1] : vector<4x128xf32> to vector<4xf32>
    %13 = vector.shape_cast %12 : vector<4xf32> to vector<4x1xf32>
    %c0_4 = arith.constant 0 : index
    %c0_5 = arith.constant 0 : index
    %c0_6 = arith.constant 0 : index
    %14 = vector.load %arg3[%c0_4, %c0_5, %c0_6] : memref<1x4x128xf32, #tpu.memory_space<vmem>>, vector<1x4x128xf32>
    %15 = vector.shape_cast %14 : vector<1x4x128xf32> to vector<4x128xf32>
    %cst_7 = arith.constant dense<0xFF800000> : vector<128xf32>
    %16 = vector.multi_reduction <maximumf>, %15, %cst_7 [0] : vector<4x128xf32> to vector<128xf32>
    %17 = vector.shape_cast %16 : vector<128xf32> to vector<1x128xf32>
    %18 = vector.broadcast %17 : vector<1x128xf32> to vector<4x128xf32>
    %19 = arith.subf %15, %18 : vector<4x128xf32>
    %20 = math.exp %19 : vector<4x128xf32>
    %cst_8 = arith.constant dense<0.000000e+00> : vector<128xf32>
    %21 = vector.multi_reduction <add>, %20, %cst_8 [0] : vector<4x128xf32> to vector<128xf32>
    %22 = vector.shape_cast %21 : vector<128xf32> to vector<1x128xf32>
    %23 = tpu.reciprocal %22 : vector<1x128xf32> -> vector<1x128xf32>
    %24 = vector.broadcast %23 : vector<1x128xf32> to vector<4x128xf32>
    %25 = arith.mulf %20, %24 : vector<4x128xf32>
    %26 = math.exp %25 : vector<4x128xf32>
    %27 = arith.mulf %15, %11 : vector<4x128xf32>
    %cst_9 = arith.constant dense<0.000000e+00> : vector<128xf32>
    %28 = vector.multi_reduction <add>, %27, %cst_9 [0] : vector<4x128xf32> to vector<128xf32>
    %29 = vector.shape_cast %28 : vector<128xf32> to vector<1x128xf32>
    %c0_10 = arith.constant 0 : index
    %c0_11 = arith.constant 0 : index
    %c0_12 = arith.constant 0 : index
    %30 = vector.load %arg6[%c0_10, %c0_11, %c0_12] : memref<1x4x1xf32, #tpu.memory_space<vmem>>, vector<1x4x1xf32>
    %31 = vector.shape_cast %30 : vector<1x4x1xf32> to vector<4x1xf32>
    %32 = arith.mulf %26, %11 : vector<4x128xf32>
    %cst_13 = arith.constant dense<0.000000e+00> : vector<4xf32>
    %33 = vector.multi_reduction <add>, %32, %cst_13 [1] : vector<4x128xf32> to vector<4xf32>
    %34 = vector.shape_cast %33 : vector<4xf32> to vector<4x1xf32>
    %35 = arith.addf %31, %34 : vector<4x1xf32>
    %c0_14 = arith.constant 0 : index
    %c0_15 = arith.constant 0 : index
    %c0_16 = arith.constant 0 : index
    %36 = vector.load %arg6[%c0_14, %c0_15, %c0_16] : memref<1x4x1xf32, #tpu.memory_space<vmem>>, vector<1x4x1xf32>
    %37 = vector.shape_cast %36 : vector<1x4x1xf32> to vector<4x1xf32>
    %38 = vector.shape_cast %35 : vector<4x1xf32> to vector<1x4x1xf32>
    tpu.vector_store %arg6[%c0_14, %c0_15, %c0_16], %38 {strides = array<i32>} : memref<1x4x1xf32, #tpu.memory_space<vmem>>, vector<1x4x1xf32>,
    %c0_17 = arith.constant 0 : index
    %c0_18 = arith.constant 0 : index
    %c0_19 = arith.constant 0 : index
    %39 = vector.load %arg7[%c0_17, %c0_18, %c0_19] : memref<1x4x1xf32, #tpu.memory_space<vmem>>, vector<1x4x1xf32>
    %40 = vector.shape_cast %39 : vector<1x4x1xf32> to vector<4x1xf32>
    %cst_20 = arith.constant dense<0.000000e+00> : vector<4xf32>
    %41 = vector.multi_reduction <add>, %26, %cst_20 [1] : vector<4x128xf32> to vector<4xf32>
    %42 = vector.shape_cast %41 : vector<4xf32> to vector<4x1xf32>
    %43 = arith.addf %42, %13 : vector<4x1xf32>
    %44 = arith.addf %40, %43 : vector<4x1xf32>
    %c0_21 = arith.constant 0 : index
    %c0_22 = arith.constant 0 : index
    %c0_23 = arith.constant 0 : index
    %45 = vector.load %arg7[%c0_21, %c0_22, %c0_23] : memref<1x4x1xf32, #tpu.memory_space<vmem>>, vector<1x4x1xf32>
    %46 = vector.shape_cast %45 : vector<1x4x1xf32> to vector<4x1xf32>
    %47 = vector.shape_cast %44 : vector<4x1xf32> to vector<1x4x1xf32>
    tpu.vector_store %arg7[%c0_21, %c0_22, %c0_23], %47 {strides = array<i32>} : memref<1x4x1xf32, #tpu.memory_space<vmem>>, vector<1x4x1xf32>,
    %c0_24 = arith.constant 0 : index
    %c0_25 = arith.constant 0 : index
    %c0_26 = arith.constant 0 : index
    %48 = vector.load %arg8[%c0_24, %c0_25, %c0_26] : memref<1x1x1xf32, #tpu.memory_space<vmem>>, vector<1x1x1xf32>
    %49 = vector.shape_cast %48 : vector<1x1x1xf32> to vector<1x1xf32>
    %50 = math.log %22 : vector<1x128xf32>
    %51 = arith.addf %17, %50 : vector<1x128xf32>
    %52 = arith.subf %51, %29 : vector<1x128xf32>
    %cst_27 = arith.constant dense<0.000000e+00> : vector<1xf32>
    %53 = vector.multi_reduction <add>, %52, %cst_27 [1] : vector<1x128xf32> to vector<1xf32>
    %54 = vector.shape_cast %53 : vector<1xf32> to vector<1x1xf32>
    %55 = arith.addf %49, %54 : vector<1x1xf32>
    %c0_28 = arith.constant 0 : index
    %c0_29 = arith.constant 0 : index
    %c0_30 = arith.constant 0 : index
    %56 = vector.load %arg8[%c0_28, %c0_29, %c0_30] : memref<1x1x1xf32, #tpu.memory_space<vmem>>, vector<1x1x1xf32>
    %57 = vector.shape_cast %56 : vector<1x1x1xf32> to vector<1x1xf32>
    %58 = vector.shape_cast %55 : vector<1x1xf32> to vector<1x1x1xf32>
    tpu.vector_store %arg8[%c0_28, %c0_29, %c0_30], %58 {strides = array<i32>} : memref<1x1x1xf32, #tpu.memory_space<vmem>>, vector<1x1x1xf32>,
    %c0_31 = arith.constant 0 : index
    %c0_32 = arith.constant 0 : index
    %c0_33 = arith.constant 0 : index
    %59 = vector.load %arg4[%c0_31, %c0_32, %c0_33] : memref<1x4x128xf32, #tpu.memory_space<vmem>>, vector<1x4x128xf32>
    %60 = vector.shape_cast %59 : vector<1x4x128xf32> to vector<4x128xf32>
    %cst_34 = arith.constant dense<0xFF800000> : vector<128xf32>
    %61 = vector.multi_reduction <maximumf>, %60, %cst_34 [0] : vector<4x128xf32> to vector<128xf32>
    %62 = vector.shape_cast %61 : vector<128xf32> to vector<1x128xf32>
    %63 = vector.broadcast %62 : vector<1x128xf32> to vector<4x128xf32>
    %64 = arith.subf %60, %63 : vector<4x128xf32>
    %65 = math.exp %64 : vector<4x128xf32>
    %cst_35 = arith.constant dense<0.000000e+00> : vector<128xf32>
    %66 = vector.multi_reduction <add>, %65, %cst_35 [0] : vector<4x128xf32> to vector<128xf32>
    %67 = vector.shape_cast %66 : vector<128xf32> to vector<1x128xf32>
    %68 = tpu.reciprocal %67 : vector<1x128xf32> -> vector<1x128xf32>
    %69 = vector.broadcast %68 : vector<1x128xf32> to vector<4x128xf32>
    %70 = arith.mulf %65, %69 : vector<4x128xf32>
    %71 = math.exp %70 : vector<4x128xf32>
    %72 = arith.mulf %60, %11 : vector<4x128xf32>
    %cst_36 = arith.constant dense<0.000000e+00> : vector<128xf32>
    %73 = vector.multi_reduction <add>, %72, %cst_36 [0] : vector<4x128xf32> to vector<128xf32>
    %74 = vector.shape_cast %73 : vector<128xf32> to vector<1x128xf32>
    %c0_37 = arith.constant 0 : index
    %c0_38 = arith.constant 0 : index
    %c0_39 = arith.constant 0 : index
    %75 = vector.load %arg9[%c0_37, %c0_38, %c0_39] : memref<1x4x1xf32, #tpu.memory_space<vmem>>, vector<1x4x1xf32>
    %76 = vector.shape_cast %75 : vector<1x4x1xf32> to vector<4x1xf32>
    %77 = arith.mulf %71, %11 : vector<4x128xf32>
    %cst_40 = arith.constant dense<0.000000e+00> : vector<4xf32>
    %78 = vector.multi_reduction <add>, %77, %cst_40 [1] : vector<4x128xf32> to vector<4xf32>
    %79 = vector.shape_cast %78 : vector<4xf32> to vector<4x1xf32>
    %80 = arith.addf %76, %79 : vector<4x1xf32>
    %c0_41 = arith.constant 0 : index
    %c0_42 = arith.constant 0 : index
    %c0_43 = arith.constant 0 : index
    %81 = vector.load %arg9[%c0_41, %c0_42, %c0_43] : memref<1x4x1xf32, #tpu.memory_space<vmem>>, vector<1x4x1xf32>
    %82 = vector.shape_cast %81 : vector<1x4x1xf32> to vector<4x1xf32>
    %83 = vector.shape_cast %80 : vector<4x1xf32> to vector<1x4x1xf32>
    tpu.vector_store %arg9[%c0_41, %c0_42, %c0_43], %83 {strides = array<i32>} : memref<1x4x1xf32, #tpu.memory_space<vmem>>, vector<1x4x1xf32>,
    %c0_44 = arith.constant 0 : index
    %c0_45 = arith.constant 0 : index
    %c0_46 = arith.constant 0 : index
    %84 = vector.load %arg10[%c0_44, %c0_45, %c0_46] : memref<1x4x1xf32, #tpu.memory_space<vmem>>, vector<1x4x1xf32>
    %85 = vector.shape_cast %84 : vector<1x4x1xf32> to vector<4x1xf32>
    %cst_47 = arith.constant dense<0.000000e+00> : vector<4xf32>
    %86 = vector.multi_reduction <add>, %71, %cst_47 [1] : vector<4x128xf32> to vector<4xf32>
    %87 = vector.shape_cast %86 : vector<4xf32> to vector<4x1xf32>
    %88 = arith.addf %87, %13 : vector<4x1xf32>
    %89 = arith.addf %85, %88 : vector<4x1xf32>
    %c0_48 = arith.constant 0 : index
    %c0_49 = arith.constant 0 : index
    %c0_50 = arith.constant 0 : index
    %90 = vector.load %arg10[%c0_48, %c0_49, %c0_50] : memref<1x4x1xf32, #tpu.memory_space<vmem>>, vector<1x4x1xf32>
    %91 = vector.shape_cast %90 : vector<1x4x1xf32> to vector<4x1xf32>
    %92 = vector.shape_cast %89 : vector<4x1xf32> to vector<1x4x1xf32>
    tpu.vector_store %arg10[%c0_48, %c0_49, %c0_50], %92 {strides = array<i32>} : memref<1x4x1xf32, #tpu.memory_space<vmem>>, vector<1x4x1xf32>,
    %c0_51 = arith.constant 0 : index
    %c0_52 = arith.constant 0 : index
    %c0_53 = arith.constant 0 : index
    %93 = vector.load %arg11[%c0_51, %c0_52, %c0_53] : memref<1x1x1xf32, #tpu.memory_space<vmem>>, vector<1x1x1xf32>
    %94 = vector.shape_cast %93 : vector<1x1x1xf32> to vector<1x1xf32>
    %95 = math.log %67 : vector<1x128xf32>
    %96 = arith.addf %62, %95 : vector<1x128xf32>
    %97 = arith.subf %96, %74 : vector<1x128xf32>
    %cst_54 = arith.constant dense<0.000000e+00> : vector<1xf32>
    %98 = vector.multi_reduction <add>, %97, %cst_54 [1] : vector<1x128xf32> to vector<1xf32>
    %99 = vector.shape_cast %98 : vector<1xf32> to vector<1x1xf32>
    %100 = arith.addf %94, %99 : vector<1x1xf32>
    %c0_55 = arith.constant 0 : index
    %c0_56 = arith.constant 0 : index
    %c0_57 = arith.constant 0 : index
    %101 = vector.load %arg11[%c0_55, %c0_56, %c0_57] : memref<1x1x1xf32, #tpu.memory_space<vmem>>, vector<1x1x1xf32>
    %102 = vector.shape_cast %101 : vector<1x1x1xf32> to vector<1x1xf32>
    %103 = vector.shape_cast %100 : vector<1x1xf32> to vector<1x1x1xf32>
    tpu.vector_store %arg11[%c0_55, %c0_56, %c0_57], %103 {strides = array<i32>} : memref<1x1x1xf32, #tpu.memory_space<vmem>>, vector<1x1x1xf32>,
    return
  }
  func.func @transform_0(%arg0: i32, %arg1: i32, %arg2: i32) -> (i32, i32, i32) {
    %c1_i32 = arith.constant 1 : i32
    %0 = arith.muli %arg0, %c1_i32 : i32
    %1 = arith.addi %0, %arg2 : i32
    %c0_i32 = arith.constant 0 : i32
    %c0_i32_0 = arith.constant 0 : i32
    return %arg1, %c0_i32, %1 : i32, i32, i32
  }
  func.func @transform_1(%arg0: i32, %arg1: i32, %arg2: i32) -> (i32, i32, i32) {
    %c1_i32 = arith.constant 1 : i32
    %0 = arith.muli %arg0, %c1_i32 : i32
    %1 = arith.addi %0, %arg2 : i32
    %c0_i32 = arith.constant 0 : i32
    %c0_i32_0 = arith.constant 0 : i32
    return %arg1, %c0_i32, %1 : i32, i32, i32
  }
  func.func @transform_2(%arg0: i32, %arg1: i32, %arg2: i32) -> (i32, i32, i32) {
    %c1_i32 = arith.constant 1 : i32
    %0 = arith.muli %arg0, %c1_i32 : i32
    %1 = arith.addi %0, %arg2 : i32
    %c0_i32 = arith.constant 0 : i32
    %c0_i32_0 = arith.constant 0 : i32
    return %arg1, %c0_i32, %1 : i32, i32, i32
  }
  func.func @transform_3(%arg0: i32, %arg1: i32, %arg2: i32) -> (i32, i32, i32) {
    %c0_i32 = arith.constant 0 : i32
    %c0_i32_0 = arith.constant 0 : i32
    %c0_i32_1 = arith.constant 0 : i32
    return %arg0, %c0_i32, %c0_i32_0 : i32, i32, i32
  }
  func.func @transform_4(%arg0: i32, %arg1: i32, %arg2: i32) -> (i32, i32, i32) {
    %c0_i32 = arith.constant 0 : i32
    %c0_i32_0 = arith.constant 0 : i32
    %c0_i32_1 = arith.constant 0 : i32
    return %arg0, %c0_i32, %c0_i32_0 : i32, i32, i32
  }
  func.func @transform_5(%arg0: i32, %arg1: i32, %arg2: i32) -> (i32, i32, i32) {
    %c0_i32 = arith.constant 0 : i32
    %c0_i32_0 = arith.constant 0 : i32
    %c0_i32_1 = arith.constant 0 : i32
    return %arg0, %c0_i32, %c0_i32_0 : i32, i32, i32
  }
  func.func @transform_6(%arg0: i32, %arg1: i32, %arg2: i32) -> (i32, i32, i32) {
    %c0_i32 = arith.constant 0 : i32
    %c0_i32_0 = arith.constant 0 : i32
    %c0_i32_1 = arith.constant 0 : i32
    return %arg0, %c0_i32, %c0_i32_0 : i32, i32, i32
  }
  func.func @transform_7(%arg0: i32, %arg1: i32, %arg2: i32) -> (i32, i32, i32) {
    %c0_i32 = arith.constant 0 : i32
    %c0_i32_0 = arith.constant 0 : i32
    %c0_i32_1 = arith.constant 0 : i32
    return %arg0, %c0_i32, %c0_i32_0 : i32, i32, i32
  }
  func.func @transform_8(%arg0: i32, %arg1: i32, %arg2: i32) -> (i32, i32, i32) {
    %c0_i32 = arith.constant 0 : i32
    %c0_i32_0 = arith.constant 0 : i32
    %c0_i32_1 = arith.constant 0 : i32
    return %arg0, %c0_i32, %c0_i32_0 : i32, i32, i32
  }
}

</mosaic_0001>

<bundles_post_ra>
// kernel: combined_loss_adv2.1
= control target key start
LH: loop header
LB: loop body
LE: loop exit
PB: predicated region body
PF: predicated region fallthrough
CT: control target
= control target key end

     0   :  { %s1011_s27 = smov 0   ;;  %s1013_s28 = smov 0   ;;  %s1144_s0 = inlined_call_operand.vmem [shape: f32[2,4,256], index: 0, kind: input, shape index: {}]   ;;  %s1145_s1 = inlined_call_operand.vmem [shape: f32[2,4,256], index: 1, kind: input, shape index: {}]   ;;  %s1146_s2 = inlined_call_operand.vmem [shape: s32[2,1,256], index: 2, kind: input, shape index: {}]   ;;  %s1147_s3 = inlined_call_operand.vmem [shape: f32[2,4,1], index: 3, kind: output, shape index: {0}]   ;;  %s1148_s4 = inlined_call_operand.vmem [shape: f32[2,4,1], index: 4, kind: output, shape index: {1}]   ;;  %s1149_s5 = inlined_call_operand.vmem [shape: f32[2,1,1], index: 5, kind: output, shape index: {2}]   ;;  %s1150_s6 = inlined_call_operand.vmem [shape: f32[2,4,1], index: 6, kind: output, shape index: {3}]   ;;  %s1151_s7 = inlined_call_operand.vmem [shape: f32[2,4,1], index: 7, kind: output, shape index: {4}]   ;;  %s1152_s8 = inlined_call_operand.vmem [shape: f32[2,1,1], index: 8, kind: output, shape index: {5}]  }
   0x1   :  { %1154 = sst [smem:[#allocation5_spill]] %s1144_s0  ;;  %s1015_s29 = smov 0  }
   0x2   :  { %s1017_s30 = smov 0   ;;  %s1019_s9 = smov 0  }
   0x3 LB: > { %1155 = sst [smem:[#allocation2_spill]] %s958_s30  ;;  %s34_s10 = sadd.s32 1, %s954_s29  ;;  %s962_s9 = sphi %s1019_s9, %s19_s9   ;;  %s958_s30 = sphi %s1017_s30, %s1161_s30   ;;  %s954_s29 = sphi %s1015_s29, %s1163_s29   ;;  %s950_s28 = sphi %s1013_s28, %s1159_s28   ;;  %s946_s27 = sphi %s1011_s27, %s1162_s27  }
   0x4   : > { %s38_s11 = sadd.s32 1, %s958_s30  ;;  %p36_p0 = scmp.ge.s32.totalorder %s34_s10, 2 }
   0x5   : > { %p850_p1 = scmp.ge.s32.totalorder %s962_s9, 1  ;;  %p338_p2 = scmp.lt.s32.totalorder %s962_s9, 5 }
   0x6   : > { %s1165_s10 = smov (%p36_p0, %s34_s10), 0  ;;  %s1167_s11 = smov (!%p36_p0, %s38_s11), %s958_s30 }
   0x7   : > { %1156 = sst [smem:[#allocation3_spill]] %s1165_s10  ;;  %p339_p3 = pnand %p850_p1, %p338_p2 }
   0x8   : > { %p40_p4 = scmp.ge.s32.totalorder %s1167_s11, 2  ;;  %p411_p5 = scmp.lt.s32.totalorder (!%p339_p3), %s946_s27, 1 }
   0x9   : > { %342 = sbr.rel (%p339_p3) target bundleno = 255 (0xff), region = 32  ;;  %p413_p6 = scmp.lt.s32.totalorder (!%p339_p3), %s950_s28, 1 }
   0xa   : > { %s1169_s11 = smov (%p40_p4, %s1167_s11), 0  ;;  %p461_p7 = scmp.eq.s32.totalorder (!%p339_p3), %s946_s27, 0 }
   0xb   : > { %1157 = sst [smem:[#allocation4_spill]] %s1169_s11  ;;  %s1158_s0 = sld [smem:[#allocation5_spill]] (!%p339_p3) }
  0x10   : > { %s412_s12 = scalar_select %p411_p5, %s946_s27, 1 }
  0x11   : > { %s1171_s28 = smov (!%p413_p6, %s950_s28), 1  ;;  %vm467_vm0 = vcmask (%p461_p7), 3072   ;;  %vm470_vm1 = vcmask (%p461_p7), 0   ;;  %v964_v0 = vmov (%p461_p7), 0.0  }
  0x12   : > { %s851_s13 = sshll.u32 %s412_s12, 1  ;;  %s856_s15 = sshll.u32 %s1171_s28, 2 }
  0x13   : > { %s416_s14 = sadd.s32 %s851_s13, %s1171_s28  ;;  %s1058_s10 = scalar_lea.vmem %s1147_s3, %s856_s15 }
  0x14   : > { %s852_s16 = sshll.u32 %s416_s14, 2  ;;  %s437_s19 = scalar_lea.vmem %s1146_s2, %s416_s14  ;;  %468 = vst.msk [vmem:[%s1058_s10] sm:$0xf] (%p461_p7), %vm467_vm0, %v964_v0 }
  0x15   : > { %s418_s22 = scalar_lea.vmem %s1158_s0, %s852_s16  ;;  %s428_s25 = scalar_lea.vmem %s1145_s1, %s852_s16 }
  0x16   : > { %s1063_s30 = scalar_lea.vmem %s1148_s4, %s856_s15  ;;  %s1068_s18 = scalar_lea.vmem %s1149_s5, %s1171_s28 }
  0x17   : > { %s1073_s23 = scalar_lea.vmem %s1150_s6, %s856_s15  ;;  %s1078_s11 = scalar_lea.vmem %s1151_s7, %s856_s15  ;;  %469 = vst.msk [vmem:[%s1063_s30] sm:$0xf] (%p461_p7), %vm467_vm0, %v964_v0 }
  0x18   : > { %s1083_s12 = scalar_lea.vmem %s1152_s8, %s1171_s28  ;;  %466 = sbr.rel (!%p461_p7) target bundleno = 31 (0x1f), region = 36  ;;  %472 = vst.msk [vmem:[%s1073_s23] sm:$0xf] (%p461_p7), %vm467_vm0, %v964_v0  ;;  %473 = vst.msk [vmem:[%s1078_s11] sm:$0xf] (%p461_p7), %vm467_vm0, %v964_v0 }
  0x19   : > { %471 = vst.msk [vmem:[%s1068_s18] sm:$0x1] (%p461_p7), %vm470_vm1, %v964_v0  ;;  %474 = vst.msk [vmem:[%s1083_s12] sm:$0x1] (%p461_p7), %vm470_vm1, %v964_v0 }
  0x1f PF: > { %v476_v1 = vlaneseq  ;;  %vm485_vm2 = vcmask 1043456   ;;  %v489_v2 = vld [vmem:[%s418_s22] sm:$0xf]  ;;  %v965_v11 = vmov 0.0   ;;  %vm542_vm4 = vcmask 0  }
  0x20   : > { %v861_v3 = vld [vmem:[%s437_s19] ss:$0 sm:$0xff]  ;;  %v490_v4 = vsel %vm485_vm2, %v489_v2, -inf  ;;  %vm525_vm5 = vcmask 3072  }
  0x21   : > { %v544_v5 = vld [vmem:[%s428_s25] sm:$0xf]  ;;  %v477_v6 = vshrl.u32 %v476_v1, 7  ;;  %v491_v7 = vrot.slane %v490_v4, 4 }
  0x22   : > { %v545_v8 = vsel %vm485_vm2, %v544_v5, -inf }
  0x23   : > { %v546_v9 = vrot.slane %v545_v8, 4  ;;  %vm482_vm3 = vcmp.eq.s32.totalorder %v477_v6, %v861_v3  ;;  %v492_v10 = vmax.f32 %v490_v4, %v491_v7 }
  0x24   : > { %v1095_v12 = vsel %vm482_vm3, 1.0, %v965_v11 }
  0x25   : > { %v547_v13 = vmax.f32 %v545_v8, %v546_v9  ;;  %v486_v14 = vsel %vm485_vm2, %v1095_v12, 0.0  ;;  %v493_v15 = vrot.slane %v492_v10, 2  ;;  %v511_v27 = vmul.f32 %v1095_v12, %v489_v2 }
  0x26   : > { %487 = vadd.xlane.f32.xlu0 %v486_v14  ;;  %v566_v44 = vmul.f32 %v1095_v12, %v544_v5 }
  0x27   : > { %v548_v16 = vrot.slane %v547_v13, 2  ;;  %v494_v17 = vmax.f32 %v492_v10, %v493_v15  ;;  %v512_v33 = vsel %vm485_vm2, %v511_v27, 0.0 }
  0x28   : > { %v513_v38 = vrot.slane %v512_v33, 4  ;;  %v567_v49 = vsel %vm485_vm2, %v566_v44, 0.0 }
  0x29   : > { %v549_v18 = vmax.f32 %v547_v13, %v548_v16  ;;  %v495_v19 = vrot.slane %v494_v17, 1  ;;  %v568_v50 = vrot.slane %v567_v49, 4 }
  0x2a   : > { %v514_v43 = vadd.f32 %v513_v38, %v512_v33 }
  0x2b   : > { %v550_v20 = vrot.slane %v549_v18, 1  ;;  %v496_v21 = vmax.f32 %v494_v17, %v495_v19  ;;  %v569_v52 = vadd.f32 %v568_v50, %v567_v49  ;;  %v534_v19 = vld [vmem:[%s1068_s18] sm:$0x1] }
  0x2c   : > { %v515_v48 = vrot.slane %v514_v43, 2 }
  0x2d   : > { %v551_v22 = vmax.f32 %v549_v18, %v550_v20  ;;  %v497_v23 = vsub.f32 %v489_v2, %v496_v21  ;;  %v570_v57 = vrot.slane %v569_v52, 2 }
  0x2e   : > { %v516_v51 = vadd.f32 %v515_v48, %v514_v43 }
  0x2f   : > { %v552_v24 = vsub.f32 %v544_v5, %v551_v22  ;;  %v498_v25 = vmul.f32 1.442695, %v497_v23  ;;  %v571_v1 = vadd.f32 %v570_v57, %v569_v52 }
  0x30   : > { %v517_v53 = vrot.slane %v516_v51, 1 }
  0x31   : > { %v553_v26 = vmul.f32 1.442695, %v552_v24  ;;  %908 = vpow2.f32 %v498_v25  ;;  %v572_v4 = vrot.slane %v571_v1, 1  ;;  %v581_v24 = vld [vmem:[%s1078_s11] sm:$0xf] }
  0x32   : > { %v518_v59 = vadd.f32 %v517_v53, %v516_v51 }
  0x33   : > { %910 = vpow2.f32 %v553_v26  ;;  %v573_v6 = vadd.f32 %v572_v4, %v571_v1  ;;  %v588_v26 = vld [vmem:[%s1083_s12] sm:$0x1] }
  0x3b   : > { %v909_v28 = vpop.eup %908 }
  0x3c   : > { %v500_v30 = vsel %vm485_vm2, %v909_v28, 0.0 }
  0x3d   : > { %v911_v29 = vpop.eup %910  ;;  %v501_v31 = vrot.slane %v500_v30, 4 }
  0x3e   : > { %v555_v32 = vsel %vm485_vm2, %v911_v29, 0.0 }
  0x3f   : > { %v556_v34 = vrot.slane %v555_v32, 4  ;;  %v502_v35 = vadd.f32 %v501_v31, %v500_v30 }
  0x41   : > { %v557_v36 = vadd.f32 %v556_v34, %v555_v32  ;;  %v503_v37 = vrot.slane %v502_v35, 2 }
  0x43   : > { %v558_v39 = vrot.slane %v557_v36, 2  ;;  %v504_v40 = vadd.f32 %v503_v37, %v502_v35  ;;  %v574_v35 = vld [vmem:[%s1073_s23] sm:$0xf] }
  0x45   : > { %v559_v41 = vadd.f32 %v558_v39, %v557_v36  ;;  %v505_v42 = vrot.slane %v504_v40, 1 }
  0x47   : > { %v560_v45 = vrot.slane %v559_v41, 1  ;;  %v506_v46 = vadd.f32 %v505_v42, %v504_v40 }
  0x49   : > { %v561_v47 = vadd.f32 %v560_v45, %v559_v41  ;;  %912 = vrcp.f32 %v506_v46 }
  0x4a   : > { %914 = vlog2.f32 %v506_v46 }
  0x4b   : > { %916 = vrcp.f32 %v561_v47 }
  0x4c   : > { %918 = vlog2.f32 %v561_v47 }
  0x53   : > { %v913_v54 = vpop.eup %912 }
  0x54   : > { %v915_v55 = vpop.eup %914  ;;  %v508_v56 = vmul.f32 %v913_v54, %v909_v28 }
  0x55   : > { %v917_v58 = vpop.eup %916  ;;  %v536_v60 = vmul.f32 0.6931472, %v915_v55 }
  0x56   : > { %v563_v61 = vmul.f32 %v917_v58, %v911_v29  ;;  %v509_v62 = vmul.f32 1.442695, %v508_v56  ;;  %v919_v2 = vpop.eup %918  ;;  %v519_v29 = vld [vmem:[%s1058_s10] sm:$0xf] }
  0x57   : > { %v537_v63 = vadd.f32 %v536_v60, %v496_v21  ;;  %v590_v5 = vmul.f32 0.6931472, %v919_v2 }
  0x58   : > { %v564_v0 = vmul.f32 1.442695, %v563_v61  ;;  %920 = vpow2.f32 %v509_v62 }
  0x59   : > { %v538_v3 = vsub.f32 %v537_v63, %v518_v59  ;;  %v591_v7 = vadd.f32 %v590_v5, %v551_v22  ;;  %v527_v22 = vld [vmem:[%s1063_s30] sm:$0xf] }
  0x5a   : > { %922 = vpow2.f32 %v564_v0 }
  0x5b   : > { %539 = vadd.xlane.f32.xlu0 %v538_v3  ;;  %v592_v13 = vsub.f32 %v591_v7, %v573_v6 }
  0x62   : > { %v921_v8 = vpop.eup %920 }
  0x63   : > { %v528_v9 = vsel %vm485_vm2, %v921_v8, 0.0  ;;  %v520_v10 = vmul.f32 %v921_v8, %v1095_v12 }
  0x64   : > { %v923_v11 = vpop.eup %922  ;;  %529 = vadd.xlane.f32.xlu0 %v528_v9 }
  0x65   : > { %v582_v14 = vsel %vm485_vm2, %v923_v11, 0.0  ;;  %v521_v15 = vsel %vm485_vm2, %v520_v10, 0.0  ;;  %v575_v16 = vmul.f32 %v923_v11, %v1095_v12 }
  0x66   : > { %583 = vadd.xlane.f32.xlu1 %v582_v14 }
  0x67   : > { %v576_v17 = vsel %vm485_vm2, %v575_v16, 0.0 }
  0x68   : > { %593 = vadd.xlane.f32.xlu0 %v592_v13 }
  0x6a   : > { %522 = vadd.xlane.f32.xlu1 %v521_v15 }
  0x6e   : > { %577 = vadd.xlane.f32.xlu1 %v576_v17 }
  0xb3   : > { %v488_v18 = vpop.xlane.xlu0 %487 }
  0xe8   : > { %v540_v20 = vpop.xlane.xlu0 %539 }
  0xe9   : > { %v541_v21 = vadd.f32 %v540_v20, %v534_v19 }
  0xeb   : > { %543 = vst.msk [vmem:[%s1068_s18] sm:$0x1] %vm542_vm4, %v541_v21 }
  0xf1   : > { %v530_v23 = vpop.xlane.xlu0 %529 }
  0xf2   : > { %v531_v12 = vadd.f32 %v530_v23, %v488_v18 }
  0xf3   : > { %v584_v25 = vpop.xlane.xlu1 %583 }
  0xf4   : > { %v585_v27 = vadd.f32 %v584_v25, %v488_v18  ;;  %v532_v28 = vadd.f32 %v531_v12, %v527_v22 }
  0xf5   : > { %v594_v30 = vpop.xlane.xlu0 %593 }
  0xf6   : > { %v586_v31 = vadd.f32 %v585_v27, %v581_v24  ;;  %533 = vst.msk [vmem:[%s1063_s30] sm:$0xf] %vm525_vm5, %v532_v28  ;;  %v595_v32 = vadd.f32 %v594_v30, %v588_v26 }
  0xf7   : > { %v523_v33 = vpop.xlane.xlu1 %522 }
  0xf8   : > { %587 = vst.msk [vmem:[%s1078_s11] sm:$0xf] %vm525_vm5, %v586_v31  ;;  %v524_v34 = vadd.f32 %v523_v33, %v519_v29 }
  0xf9   : > { %596 = vst.msk [vmem:[%s1083_s12] sm:$0x1] %vm542_vm4, %v595_v32 }
  0xfa   : > { %526 = vst.msk [vmem:[%s1058_s10] sm:$0xf] %vm525_vm5, %v524_v34 }
  0xfb   : > { %v578_v36 = vpop.xlane.xlu1 %577 }
  0xfc   : > { %v579_v37 = vadd.f32 %v578_v36, %v574_v35 }
  0xfe   : > { %580 = vst.msk [vmem:[%s1073_s23] sm:$0xf] %vm525_vm5, %v579_v37 }
  0xff PF: > { %s19_s9 = sadd.s32 1, %s962_s9   ;;  %s1159_s28 = sld [smem:[#allocation2_spill]] }
 0x100   : > { %p16_p8 = scmp.ge.s32.totalorder %s19_s9, 6   ;;  %s1160_s0 = sld [smem:[#allocation3_spill]] }
 0x101   : > { %s1161_s30 = sld [smem:[#allocation4_spill]]  ;;  %s1162_s27 = smov %s954_s29 }
 0x102   :  { %18 = sbr.rel (!%p16_p8) target bundleno = 3 (0x3), region = 132 }
 0x106   : > { %s1163_s29 = smov %s1160_s0 }

</bundles_post_ra>
